<compile_context>
chip_gen: v7x
topology: tpu7x:2x2x1
jax: 0.10.0
libtpu: 0.0.40
codegen_flags: <defaults>
</compile_context>

<pallas_src>
import functools

import jax
import jax.numpy as jnp
from jax.experimental import pallas as pl
from jax.experimental.pallas import tpu as pltpu

LANE = 128          # lane-dense padded width for hidden / weight columns
HIDDEN = 24         # logical hidden width of the DQN MLP
MAX_TB = 32768      # cap on batch tile rows (un-padded x tile at 32K rows ~ 0.5 MiB)


def _round_up(n, m):
    return ((n + m - 1) // m) * m


def dqn_kernel(x_ref, w1_ref, w2_ref, w3_ref, b_ref, o_ref, *, action_size):
    # One batch tile; all three GEMMs + ReLUs fused, weights/biases resident in VMEM.
    x = x_ref[...]                                                       # (TB, S)
    h1 = jnp.dot(x, w1_ref[...], preferred_element_type=jnp.float32) + b_ref[0:1, :]
    h1 = jnp.maximum(h1, 0.0)                                            # (TB, 128)
    h2 = jnp.dot(h1, w2_ref[...], preferred_element_type=jnp.float32) + b_ref[1:2, :]
    h2 = jnp.maximum(h2, 0.0)                                            # (TB, 128)
    q = jnp.dot(h2, w3_ref[...], preferred_element_type=jnp.float32) + b_ref[2:3, :]
    # Store only the useful (logical) output columns — narrow contiguous writeback.
    o_ref[...] = q[:, :action_size].astype(o_ref.dtype)                 # (TB, A)


def _pad_to(a, shape):
    return jnp.pad(a, [(0, s - d) for d, s in zip(a.shape, shape)])


def pack_params(params):
    """Pack weights once: w1 -> (S,128), w2/w3 -> (128,128), biases -> one (8,128)."""
    w1, b1, w2, b2, w3, b3 = params
    state_size = w1.shape[0]
    w1p = _pad_to(w1, (state_size, LANE))        # keep logical input width S
    w2p = _pad_to(w2, (LANE, LANE))
    w3p = _pad_to(w3, (LANE, LANE))
    bp = jnp.zeros((8, LANE), jnp.float32)
    bp = bp.at[0, : b1.shape[0]].set(b1)
    bp = bp.at[1, : b2.shape[0]].set(b2)
    bp = bp.at[2, : b3.shape[0]].set(b3)
    return (w1p, w2p, w3p, bp)


@functools.partial(jax.jit, static_argnames=("action_size",))
def dqn_forward(x, packed_params, *, action_size):
    w1p, w2p, w3p, bias_p = packed_params
    B, S = x.shape

    # Batch tiling: 1 step for tiny batches; otherwise >=2 steps so v7x's two
    # TensorCores both get work; cap the tile so huge replay batches still pipeline.
    b8 = _round_up(B, 8)
    if B <= 8:
        steps = 1
    else:
        steps = max(2, pl.cdiv(b8, MAX_TB))
    tb = _round_up(pl.cdiv(b8, steps), 8)
    bp = pl.cdiv(B, tb) * tb
    grid = (bp // tb,)

    # Only the batch dim is padded (rows of zeros); features stay at logical width.
    xp = x if bp == B else jnp.pad(x, ((0, bp - B), (0, 0)))

    weight_spec = lambda shape: pl.BlockSpec(shape, lambda i: (0, 0))  # VMEM-resident

    flops = 2 * B * (S * HIDDEN + HIDDEN * HIDDEN + HIDDEN * action_size)
    bytes_accessed = 4 * (
        bp * S + bp * action_size + w1p.size + w2p.size + w3p.size + bias_p.size
    )

    out = pl.pallas_call(
        functools.partial(dqn_kernel, action_size=action_size),
        out_shape=jax.ShapeDtypeStruct((bp, action_size), jnp.float32),
        grid_spec=pl.GridSpec(
            grid=grid,
            in_specs=[
                pl.BlockSpec((tb, S), lambda i: (i, 0)),      # x: tiled over batch
                weight_spec(w1p.shape),                        # w1 (S, 128)
                weight_spec(w2p.shape),                        # w2 (128, 128)
                weight_spec(w3p.shape),                        # w3 (128, 128)
                weight_spec(bias_p.shape),                     # biases (8, 128)
            ],
            out_specs=pl.BlockSpec((tb, action_size), lambda i: (i, 0)),
        ),
        compiler_params=pltpu.CompilerParams(
            dimension_semantics=("parallel",),                 # shard batch on v7x's 2 TCs
        ),
        cost_estimate=pl.CostEstimate(
            flops=flops, transcendentals=0, bytes_accessed=bytes_accessed
        ),
    )(xp, w1p, w2p, w3p, bias_p)

    return out if bp == B else out[:B]


def init_params(key, state_size, action_size):
    # Deterministic init mirroring nn.Linear's default U(-1/sqrt(fan_in), +1/sqrt(fan_in)).
    # Weights stored transposed vs. PyTorch as (in_features, out_features) so y = x @ W + b.
    def linear(key, fan_in, fan_out):
        kw, kb = jax.random.split(key)
        bound = 1.0 / jnp.sqrt(jnp.float32(fan_in))
        w = jax.random.uniform(kw, (fan_in, fan_out), jnp.float32, -bound, bound)
        b = jax.random.uniform(kb, (fan_out,), jnp.float32, -bound, bound)
        return w, b

    k1, k2, k3 = jax.random.split(key, 3)
    w1, b1 = linear(k1, state_size, HIDDEN)
    w2, b2 = linear(k2, HIDDEN, HIDDEN)
    w3, b3 = linear(k3, HIDDEN, action_size)
    return (w1, b1, w2, b2, w3, b3)


def reference_forward(x, params):
    w1, b1, w2, b2, w3, b3 = params
    h1 = jnp.maximum(x @ w1 + b1, 0.0)
    h2 = jnp.maximum(h1 @ w2 + b2, 0.0)
    return h2 @ w3 + b3


# TODO(synk): for very large replay-buffer batches, stream x/out as bf16 (keep f32
# accumulation via preferred_element_type) to further halve the already-small HBM
# traffic on v5e; kept f32 here for bit-tight parity with the reference.

if __name__ == "__main__":
    state_size, action_size, batch = 4, 2, 8  # CartPole-like sizes
    key = jax.random.PRNGKey(0)
    kx, kp, kx2 = jax.random.split(key, 3)

    params = init_params(kp, state_size, action_size)
    packed = pack_params(params)

    # Small, CartPole-shaped check (single grid step, tb=8).
    x = jax.random.normal(kx, (batch, state_size), jnp.float32)
    out = jax.block_until_ready(dqn_forward(x, packed, action_size=action_size))
    ref = reference_forward(x, params)
    assert out.shape == (batch, action_size)
    assert jnp.allclose(out, ref, atol=1e-5, rtol=1e-5), "mismatch vs JAX reference (B=8)"

    # Larger, non-multiple-of-tile batch: exercises 2-step grid + batch padding path.
    big_batch = 300
    x2 = jax.random.normal(kx2, (big_batch, state_size), jnp.float32)
    out2 = jax.block_until_ready(dqn_forward(x2, packed, action_size=action_size))
    ref2 = reference_forward(x2, params)
    assert out2.shape == (big_batch, action_size)
    assert jnp.allclose(out2, ref2, atol=1e-5, rtol=1e-5), "mismatch vs JAX reference (B=300)"

    print("KERNEL_OK")
</pallas_src>

<mosaic_0001>
module attributes {stable_mosaic.version = 11 : i64} {
  func.func @dqn_kernel(%arg0: i32, %arg1: memref<8x4xf32, #tpu.memory_space<vmem>>, %arg2: memref<4x128xf32, #tpu.memory_space<vmem>>, %arg3: memref<128x128xf32, #tpu.memory_space<vmem>>, %arg4: memref<128x128xf32, #tpu.memory_space<vmem>>, %arg5: memref<8x128xf32, #tpu.memory_space<vmem>>, %arg6: memref<8x2xf32, #tpu.memory_space<vmem>>) attributes {dimension_semantics = [#tpu.dimension_semantics<parallel>], iteration_bounds = array<i64: 1>, scalar_prefetch = 0 : i64, scratch_operands = 0 : i64, tpu.core_type = #tpu.core_type<tc>, window_params = [{transform_indices = @transform_0, window_bounds = array<i64: 8, 4>}, {pipeline_mode = #tpu.pipeline_mode<synchronous>, transform_indices = @transform_1, window_bounds = array<i64: 4, 128>}, {pipeline_mode = #tpu.pipeline_mode<synchronous>, transform_indices = @transform_2, window_bounds = array<i64: 128, 128>}, {pipeline_mode = #tpu.pipeline_mode<synchronous>, transform_indices = @transform_3, window_bounds = array<i64: 128, 128>}, {pipeline_mode = #tpu.pipeline_mode<synchronous>, transform_indices = @transform_4, window_bounds = array<i64: 8, 128>}, {transform_indices = @transform_5, window_bounds = array<i64: 8, 2>}]} {
    %c0 = arith.constant 0 : index
    %c0_0 = arith.constant 0 : index
    %0 = vector.load %arg1[%c0, %c0_0] : memref<8x4xf32, #tpu.memory_space<vmem>>, vector<8x4xf32>
    %c0_1 = arith.constant 0 : index
    %c0_2 = arith.constant 0 : index
    %1 = vector.load %arg2[%c0_1, %c0_2] : memref<4x128xf32, #tpu.memory_space<vmem>>, vector<4x128xf32>
    %cst = arith.constant dense<0.000000e+00> : vector<8x128xf32>
    %2 = tpu.matmul %0, %1, %cst {dimension_numbers = #tpu.dot_dimension_numbers<[1], [0], [0], [1], [0, 0, 1, 1], [], []>} : vector<8x4xf32>, vector<4x128xf32>, vector<8x128xf32> -> vector<8x128xf32>
    %c0_3 = arith.constant 0 : index
    %c0_4 = arith.constant 0 : index
    %3 = vector.load %arg5[%c0_3, %c0_4] : memref<8x128xf32, #tpu.memory_space<vmem>>, vector<1x128xf32>
    %4 = vector.broadcast %3 : vector<1x128xf32> to vector<8x128xf32>
    %5 = arith.addf %2, %4 : vector<8x128xf32>
    %cst_5 = arith.constant 0.000000e+00 : f32
    %6 = vector.broadcast %cst_5 : f32 to vector<8x128xf32>
    %7 = arith.maximumf %5, %6 : vector<8x128xf32>
    %c0_6 = arith.constant 0 : index
    %c0_7 = arith.constant 0 : index
    %8 = vector.load %arg3[%c0_6, %c0_7] : memref<128x128xf32, #tpu.memory_space<vmem>>, vector<128x128xf32>
    %cst_8 = arith.constant dense<0.000000e+00> : vector<8x128xf32>
    %9 = tpu.matmul %7, %8, %cst_8 {dimension_numbers = #tpu.dot_dimension_numbers<[1], [0], [0], [1], [0, 0, 1, 1], [], []>} : vector<8x128xf32>, vector<128x128xf32>, vector<8x128xf32> -> vector<8x128xf32>
    %c1 = arith.constant 1 : index
    %c0_9 = arith.constant 0 : index
    %10 = vector.load %arg5[%c1, %c0_9] : memref<8x128xf32, #tpu.memory_space<vmem>>, vector<1x128xf32>
    %11 = vector.broadcast %10 : vector<1x128xf32> to vector<8x128xf32>
    %12 = arith.addf %9, %11 : vector<8x128xf32>
    %cst_10 = arith.constant 0.000000e+00 : f32
    %13 = vector.broadcast %cst_10 : f32 to vector<8x128xf32>
    %14 = arith.maximumf %12, %13 : vector<8x128xf32>
    %c0_11 = arith.constant 0 : index
    %c0_12 = arith.constant 0 : index
    %15 = vector.load %arg4[%c0_11, %c0_12] : memref<128x128xf32, #tpu.memory_space<vmem>>, vector<128x128xf32>
    %cst_13 = arith.constant dense<0.000000e+00> : vector<8x128xf32>
    %16 = tpu.matmul %14, %15, %cst_13 {dimension_numbers = #tpu.dot_dimension_numbers<[1], [0], [0], [1], [0, 0, 1, 1], [], []>} : vector<8x128xf32>, vector<128x128xf32>, vector<8x128xf32> -> vector<8x128xf32>
    %c2 = arith.constant 2 : index
    %c0_14 = arith.constant 0 : index
    %17 = vector.load %arg5[%c2, %c0_14] : memref<8x128xf32, #tpu.memory_space<vmem>>, vector<1x128xf32>
    %18 = vector.broadcast %17 : vector<1x128xf32> to vector<8x128xf32>
    %19 = arith.addf %16, %18 : vector<8x128xf32>
    %20 = vector.extract_strided_slice %19 {offsets = [0, 0], sizes = [8, 2], strides = [1, 1]} : vector<8x128xf32> to vector<8x2xf32>
    %c0_15 = arith.constant 0 : index
    %c0_16 = arith.constant 0 : index
    %21 = vector.load %arg6[%c0_15, %c0_16] : memref<8x2xf32, #tpu.memory_space<vmem>>, vector<8x2xf32>
    tpu.vector_store %arg6[%c0_15, %c0_16], %20 {strides = array<i32>} : memref<8x2xf32, #tpu.memory_space<vmem>>, vector<8x2xf32>,
    return
  }
  func.func @transform_0(%arg0: i32) -> (i32, i32) {
    %c0_i32 = arith.constant 0 : i32
    %c0_i32_0 = arith.constant 0 : i32
    return %arg0, %c0_i32 : i32, i32
  }
  func.func @transform_1(%arg0: i32) -> (i32, i32) {
    %c0_i32 = arith.constant 0 : i32
    %c0_i32_0 = arith.constant 0 : i32
    %c0_i32_1 = arith.constant 0 : i32
    return %c0_i32, %c0_i32_0 : i32, i32
  }
  func.func @transform_2(%arg0: i32) -> (i32, i32) {
    %c0_i32 = arith.constant 0 : i32
    %c0_i32_0 = arith.constant 0 : i32
    %c0_i32_1 = arith.constant 0 : i32
    return %c0_i32, %c0_i32_0 : i32, i32
  }
  func.func @transform_3(%arg0: i32) -> (i32, i32) {
    %c0_i32 = arith.constant 0 : i32
    %c0_i32_0 = arith.constant 0 : i32
    %c0_i32_1 = arith.constant 0 : i32
    return %c0_i32, %c0_i32_0 : i32, i32
  }
  func.func @transform_4(%arg0: i32) -> (i32, i32) {
    %c0_i32 = arith.constant 0 : i32
    %c0_i32_0 = arith.constant 0 : i32
    %c0_i32_1 = arith.constant 0 : i32
    return %c0_i32, %c0_i32_0 : i32, i32
  }
  func.func @transform_5(%arg0: i32) -> (i32, i32) {
    %c0_i32 = arith.constant 0 : i32
    %c0_i32_0 = arith.constant 0 : i32
    return %arg0, %c0_i32 : i32, i32
  }
}

</mosaic_0001>

<bundles_post_ra>
// kernel: dqn_forward.1
= control target key start
LH: loop header
LB: loop body
LE: loop exit
PB: predicated region body
PF: predicated region fallthrough
CT: control target
= control target key end

     0   :  { %10 = vsyncpa [#allocation3], 0  ;;  %s642_s0 = inlined_call_operand.vmem [shape: f32[8,4], index: 0, kind: input, shape index: {}]   ;;  %s643_s1 = inlined_call_operand.vmem [shape: f32[4,128], index: 1, kind: input, shape index: {}]   ;;  %s644_s2 = inlined_call_operand.hbm [shape: f32[128,128], index: 2, kind: input, shape index: {}]   ;;  %s645_s3 = inlined_call_operand.hbm [shape: f32[128,128], index: 3, kind: input, shape index: {}]   ;;  %s646_s4 = inlined_call_operand.vmem [shape: f32[8,128], index: 4, kind: input, shape index: {}]   ;;  %s647_s5 = inlined_call_operand.vmem [shape: f32[8,2], index: 5, kind: output, shape index: {}]  }
   0x1   :  { %11 = vsyncpa [#allocation5], 0  ;;  %s544_s18 = smov [#allocation2]   ;;  %s496_s22 = scalar_lea.hbm %s644_s2, 2048 }
   0x2   :  { %s21_s19 = sshll.u32 %s544_s18, 4  ;;  %p497_p0 = scmp.ne.s32.totalorder %s644_s2, %s496_s22  ;;  %s22_s19 = int_to_ptr.vmem [resolvable:$true] %s21_s19 }
   0x3   :  { %p500_p1 = scmp.lt.u32.totalorder %s496_s22, %s644_s2 }
   0x5   :  { %p502_p2 = pnand %p500_p1, %p497_p0 }
   0x7   :  { %505 = shalt.err (!%p502_p2)
}
   0x8   :  { %s506_s27 = scalar_lea.vmem %s22_s19, 2048  ;;  %p511_p4 = scmp.lt.s32.totalorder %s22_s19, %s22_s19 }
   0x9   :  { %p507_p3 = scmp.ne.s32.totalorder %s22_s19, %s506_s27  ;;  %p512_p5 = scmp.lt.s32.totalorder %s506_s27, %s506_s27 }
   0xb   :  { %p513_p6 = por %p512_p5, %p511_p4 }
   0xd   :  { %p514_p7 = pnand %p513_p6, %p507_p3 }
   0xf   :  { %517 = shalt.err (!%p514_p7)
}
  0x10   :  { %s545_s28 = smov 128   ;;  %s546_s29 = smov 8  }
  0x11   :  { %27 = dma.hbm_to_vmem [thread:$0]  %s644_s2, 2048, %s22_s19, [#allocation3], %s545_s28, %s545_s28, %s546_s29  }
  0x12   :  { %s547_s7 = smov [#allocation4]   ;;  %s518_s11 = scalar_lea.hbm %s645_s3, 2048 }
  0x13   :  { %s33_s8 = sshll.u32 %s547_s7, 4  ;;  %p519_p8 = scmp.ne.s32.totalorder %s645_s3, %s518_s11  ;;  %s34_s8 = int_to_ptr.vmem [resolvable:$true] %s33_s8 }
  0x14   :  { %p522_p9 = scmp.lt.u32.totalorder %s518_s11, %s645_s3 }
  0x16   :  { %p524_p10 = pnand %p522_p9, %p519_p8 }
  0x18   :  { %527 = shalt.err (!%p524_p10)
}
  0x19   :  { %s528_s16 = scalar_lea.vmem %s34_s8, 2048  ;;  %p533_p12 = scmp.lt.s32.totalorder %s34_s8, %s34_s8 }
  0x1a   :  { %p529_p11 = scmp.ne.s32.totalorder %s34_s8, %s528_s16  ;;  %p534_p13 = scmp.lt.s32.totalorder %s528_s16, %s528_s16 }
  0x1c   :  { %p535_p0 = por %p534_p13, %p533_p12 }
  0x1e   :  { %p536_p1 = pnand %p535_p0, %p529_p11 }
  0x20   :  { %539 = shalt.err (!%p536_p1)
}
  0x21   :  { %39 = dma.hbm_to_vmem [thread:$0]  %s645_s3, 2048, %s34_s8, [#allocation5], %s545_s28, %s545_s28, %s546_s29  }
  0x22   :  { %540 = dma.done.wait [#allocation3], 2048  }
  0x23   :  { %541 = vsyncadd [#allocation3], 4294965248 }
  0x24   :  { %542 = dma.done.wait [#allocation5], 2048  }
  0x25   :  { %543 = vsyncadd [#allocation5], 4294965248  ;;  %v548_v0 = vmov 0.0   ;;  %vm549_vm0 = vmmov 0   ;;  %v550_v1 = vmov 0.0|0.0   ;;  %vm59_vm1 = vcmask 1043456  }
  0x26   :  { %366 = vmatprep.subr.mxu0 %v548_v0  ;;  %368 = vmatprep.mubr.msk.f32.mxu0 %vm549_vm0, %v548_v0  ;;  %vm55_vm2 = vcmask 31744   ;;  %v49_v2 = vld [vmem:[%s643_s1] sm:$0xf]  ;;  %v134_v4 = vld [vmem:[#allocation2] sm:$0xff]  ;;  %v135_v5 = vld [vmem:[#allocation2 + $0x8] sm:$0xff]  ;;  %vm317_vm3 = vcmask 15360  }
  0x27   :  { %441 = vmatprep.subr.bf16.mxu1 %v550_v1  ;;  %403 = vmatprep.mubr.msk.f32.mxu1 %vm549_vm0, %v548_v0  ;;  %v48_v3 = vld [vmem:[%s642_s0] sm:$0xff]  ;;  %v136_v6 = vld [vmem:[#allocation2 + $0x10] sm:$0xff]  ;;  %v442_v8 = vpack.c.bf16 %v135_v5, %v134_v4  ;;  %v138_v10 = vld [vmem:[#allocation2 + $0x20] sm:$0xff] }
  0x28   :  { %367 = vmatpush3.msk.msra.mxu0 %vm59_vm1, %v49_v2  ;;  %v137_v7 = vld [vmem:[#allocation2 + $0x18] sm:$0xff]  ;;  %v139_v11 = vld [vmem:[#allocation2 + $0x28] sm:$0xff]  ;;  %v140_v13 = vld [vmem:[#allocation2 + $0x30] sm:$0xff] }
  0x29   :  { %369 = vmatmul.mubr.msk.f32.vlgmr.msra.gmra.mrb[0].mxu0 %vm55_vm2, %v48_v3  ;;  %465 = vmatprep.subr.bf16.mxu0 %v550_v1  ;;  %v445_v9 = vpack.c.bf16 %v137_v7, %v136_v6  ;;  %v448_v12 = vpack.c.bf16 %v139_v11, %v138_v10  ;;  %v141_v14 = vld [vmem:[#allocation2 + $0x38] sm:$0xff]  ;;  %v142_v16 = vld [vmem:[#allocation2 + $0x40] sm:$0xff]  ;;  %v143_v17 = vld [vmem:[#allocation2 + $0x48] sm:$0xff] }
  0x2a   :  { %438 = vmatprep.mubr.msk.f32.mxu0 %vm549_vm0, %v548_v0  ;;  %443 = vmatpush3.bf16.msra.mxu1 %v442_v8  ;;  %v451_v15 = vpack.c.bf16 %v141_v14, %v140_v13  ;;  %v454_v18 = vpack.c.bf16 %v143_v17, %v142_v16  ;;  %v144_v19 = vld [vmem:[#allocation2 + $0x50] sm:$0xff]  ;;  %v145_v20 = vld [vmem:[#allocation2 + $0x58] sm:$0xff]  ;;  %v146_v22 = vld [vmem:[#allocation2 + $0x60] sm:$0xff] }
  0x2b   :  { %444 = vmatprep.subr.bf16.mxu1 %v550_v1  ;;  %v457_v21 = vpack.c.bf16 %v145_v20, %v144_v19  ;;  %v147_v23 = vld [vmem:[#allocation2 + $0x68] sm:$0xff]  ;;  %v148_v25 = vld [vmem:[#allocation2 + $0x70] sm:$0xff]  ;;  %v149_v26 = vld [vmem:[#allocation2 + $0x78] sm:$0xff] }
  0x2c   :  { %v460_v24 = vpack.c.bf16 %v147_v23, %v146_v22  ;;  %v463_v27 = vpack.c.bf16 %v149_v26, %v148_v25  ;;  %v226_v28 = vld [vmem:[#allocation4] sm:$0xff]  ;;  %v227_v29 = vld [vmem:[#allocation4 + $0x8] sm:$0xff]  ;;  %v228_v30 = vld [vmem:[#allocation4 + $0x10] sm:$0xff] }
  0x2d   :  { %v466_v31 = vpack.c.bf16 %v227_v29, %v226_v28  ;;  %v229_v32 = vld [vmem:[#allocation4 + $0x18] sm:$0xff]  ;;  %v230_v34 = vld [vmem:[#allocation4 + $0x20] sm:$0xff]  ;;  %v231_v35 = vld [vmem:[#allocation4 + $0x28] sm:$0xff] }
  0x2e   :  { %446 = vmatpush3.bf16.msra.mxu1 %v445_v9  ;;  %v469_v33 = vpack.c.bf16 %v229_v32, %v228_v30  ;;  %v472_v36 = vpack.c.bf16 %v231_v35, %v230_v34  ;;  %v232_v37 = vld [vmem:[#allocation4 + $0x30] sm:$0xff]  ;;  %v233_v38 = vld [vmem:[#allocation4 + $0x38] sm:$0xff]  ;;  %v234_v40 = vld [vmem:[#allocation4 + $0x40] sm:$0xff] }
  0x2f   :  { %447 = vmatprep.subr.bf16.mxu1 %v550_v1  ;;  %467 = vmatpush3.bf16.msra.mxu0 %v466_v31  ;;  %v475_v39 = vpack.c.bf16 %v233_v38, %v232_v37  ;;  %v235_v41 = vld [vmem:[#allocation4 + $0x48] sm:$0xff]  ;;  %v236_v43 = vld [vmem:[#allocation4 + $0x50] sm:$0xff]  ;;  %v237_v44 = vld [vmem:[#allocation4 + $0x58] sm:$0xff] }
  0x30   :  { %468 = vmatprep.subr.bf16.mxu0 %v550_v1  ;;  %v478_v42 = vpack.c.bf16 %v235_v41, %v234_v40  ;;  %v481_v45 = vpack.c.bf16 %v237_v44, %v236_v43  ;;  %v238_v46 = vld [vmem:[#allocation4 + $0x60] sm:$0xff]  ;;  %v239_v47 = vld [vmem:[#allocation4 + $0x68] sm:$0xff]  ;;  %v325_v49 = vld [vmem:[%s646_s4] ss:$0 sm:$0xff] }
  0x31   :  { %v484_v48 = vpack.c.bf16 %v239_v47, %v238_v46  ;;  %v240_v54 = vld [vmem:[#allocation4 + $0x70] sm:$0xff]  ;;  %v241_v55 = vld [vmem:[#allocation4 + $0x78] sm:$0xff] }
  0x32   :  { %449 = vmatpush3.bf16.msra.mxu1 %v448_v12  ;;  %v487_v56 = vpack.c.bf16 %v241_v55, %v240_v54  ;;  %v328_v57 = vld [vmem:[%s646_s4 + $0x1] ss:$0 sm:$0xff]  ;;  %v329_v62 = vld [vmem:[%s646_s4 + $0x2] ss:$0 sm:$0xff] }
  0x33   :  { %450 = vmatprep.subr.bf16.mxu1 %v550_v1  ;;  %470 = vmatpush3.bf16.msra.mxu0 %v469_v33 }
  0x34   :  { %471 = vmatprep.subr.bf16.mxu0 %v550_v1 }
  0x36   :  { %452 = vmatpush3.bf16.msra.mxu1 %v451_v15 }
  0x37   :  { %453 = vmatprep.subr.bf16.mxu1 %v550_v1  ;;  %473 = vmatpush3.bf16.msra.mxu0 %v472_v36 }
  0x38   :  { %474 = vmatprep.subr.bf16.mxu0 %v550_v1 }
  0x3a   :  { %455 = vmatpush3.bf16.msra.mxu1 %v454_v18 }
  0x3b   :  { %456 = vmatprep.subr.bf16.mxu1 %v550_v1  ;;  %476 = vmatpush3.bf16.msra.mxu0 %v475_v39 }
  0x3c   :  { %477 = vmatprep.subr.bf16.mxu0 %v550_v1 }
  0x3e   :  { %458 = vmatpush3.bf16.msra.mxu1 %v457_v21 }
  0x3f   :  { %459 = vmatprep.subr.bf16.mxu1 %v550_v1  ;;  %479 = vmatpush3.bf16.msra.mxu0 %v478_v42 }
  0x40   :  { %480 = vmatprep.subr.bf16.mxu0 %v550_v1 }
  0x42   :  { %461 = vmatpush3.bf16.msra.mxu1 %v460_v24 }
  0x43   :  { %462 = vmatprep.subr.bf16.mxu1 %v550_v1  ;;  %482 = vmatpush3.bf16.msra.mxu0 %v481_v45 }
  0x44   :  { %483 = vmatprep.subr.bf16.mxu0 %v550_v1 }
  0x46   :  { %464 = vmatpush3.bf16.msra.mxu1 %v463_v27 }
  0x47   :  { %485 = vmatpush3.bf16.msra.mxu0 %v484_v48 }
  0x48   :  { %486 = vmatprep.subr.bf16.mxu0 %v550_v1 }
  0x4b   :  { %488 = vmatpush3.bf16.msra.mxu0 %v487_v56 }
  0xfc   :  { %v129_v50 = vpop.f32.mrb[0].mxu0 }
  0xfd   :  { %v130_v51 = vadd.f32 %v325_v49, %v129_v50  ;;  %v370_v52 = vpop.f32.mrb[1].mxu0 }
  0xff   :  { %v133_v53 = vmax.f32 %v130_v51, 0.0 }
 0x101   :  { %404 = vmatmul.mubr.f32.vlgmr.msra.gmra.mrb[0].mxu1 %v133_v53 }
 0x1d4   :  { %v221_v58 = vpop.f32.mrb[0].mxu1 }
 0x1d5   :  { %v222_v59 = vadd.f32 %v328_v57, %v221_v58  ;;  %v405_v60 = vpop.f32.mrb[1].mxu1 }
 0x1d7   :  { %v225_v61 = vmax.f32 %v222_v59, 0.0 }
 0x1d9   :  { %439 = vmatmul.mubr.f32.vlgmr.msra.gmra.mrb[2].mxu0 %v225_v61 }
 0x2ac   :  { %v313_v63 = vpop.f32.mrb[2].mxu0 }
 0x2ad   :  { %v314_v0 = vadd.f32 %v329_v62, %v313_v63  ;;  %v440_v1 = vpop.f32.mrb[3].mxu0 }
 0x2af   :  { %318 = vst.msk [vmem:[%s647_s5] sm:$0xff] %vm317_vm3, %v314_v0 }
 0x2b0   :  { %323 = vsyncpa [#allocation3], 1 }
 0x2b1   :  { %324 = vsyncpa [#allocation5], 1 }

</bundles_post_ra>
